<compile_context>
chip_gen: v5e
topology: v5e:2x2
jax: 0.10.0
libtpu: 0.0.40
codegen_flags: <defaults>
</compile_context>

<pallas_src>
import math

import jax
import jax.numpy as jnp
import numpy as np
from jax.experimental import pallas as pl
from jax.experimental.pallas import tpu as pltpu


# ----------------------------- kernel ------------------------------------------

def make_kernel(N, H, W, C):
    NH, WC = N * H, W * C
    inv_cnt = 1.0 / float(N * H * W)      # BN count over (N, H, W) per channel
    eps = 1e-5
    assert W & (W - 1) == 0, "lane roll-and-add BN tree assumes W is a power of two"
    log2w = W.bit_length() - 1

    def kernel(x_ref, band1_ref, diag1_ref, g1_ref, be1_ref,
               band2_ref, diag2_ref, g2_ref, be2_ref, o_ref):
        x = x_ref[...]                     # (NH, WC) f32, lane-dense

        # h-boundary masks for the kh=0 / kh=2 taps (shared by both convs); the
        # masks also kill the circular wrap across batch-image boundaries.
        row_h = jax.lax.broadcasted_iota(jnp.int32, (NH, WC), 0) % H
        top_edge = row_h == 0              # reading h-1 would be padding / prev image
        bot_edge = row_h == (H - 1)        # reading h+1 would be padding / next image

        def conv3x3(y, band_ref):
            # kh taps: exact-f32 sublane rolls (XLU slot) + boundary masks (VPU slot).
            y_up = jnp.where(top_edge, 0.0, pltpu.roll(y, shift=1, axis=0))       # h-1
            y_dn = jnp.where(bot_edge, 0.0, pltpu.roll(y, shift=NH - 1, axis=0))  # h+1
            # kw taps + channel mixing: 3 accumulated bf16 MXU dots, f32 accumulate.
            acc = jnp.dot(y_up.astype(jnp.bfloat16), band_ref[0],
                          preferred_element_type=jnp.float32)
            acc = acc + jnp.dot(y.astype(jnp.bfloat16), band_ref[1],
                                preferred_element_type=jnp.float32)
            acc = acc + jnp.dot(y_dn.astype(jnp.bfloat16), band_ref[2],
                                preferred_element_type=jnp.float32)
            return acc                                                    # (NH, WC)

        def bn(y, gamma, beta):
            # One fused stats reduce: [y | y*y] along lanes, single axis-0 XLU reduce.
            stats = jnp.concatenate([y, y * y], axis=1)          # (NH, 2*WC) f32
            s = jnp.sum(stats, axis=0, keepdims=True)            # (1, 2*WC) exact f32
            s = jnp.concatenate([s[:, :WC], s[:, WC:]], axis=0)  # (2, WC): [sum; sumsq]
            # Per-channel reduce + broadcast across the W lane groups: exact-f32
            # lane roll-and-add tree (log2(W) XLU rolls), no MXU, no msum weight DMA.
            for k in range(log2w):
                s = s + pltpu.roll(s, shift=(1 << k) * C, axis=1)
            mu = s[0:1, :] * inv_cnt
            ex2 = s[1:2, :] * inv_cnt
            var = ex2 - mu * mu
            return (y - mu) * (jax.lax.rsqrt(var + eps) * gamma) + beta

        # ---- LBCLayer 1: ternary 3x3 conv -> ReLU -> 1x1 conv; then BN1 ----
        # (1x1 bias omitted: a per-channel constant is cancelled exactly by the
        #  training-mode BN mean subtraction that follows.)
        y = conv3x3(x, band1_ref)
        y = jnp.maximum(y, 0.0)
        y = jnp.dot(y.astype(jnp.bfloat16), diag1_ref[...],
                    preferred_element_type=jnp.float32)
        y = bn(y, g1_ref[...], be1_ref[...])

        # ---- LBCLayer 2 + BN2 ----
        y = conv3x3(y, band2_ref)
        y = jnp.maximum(y, 0.0)
        y = jnp.dot(y.astype(jnp.bfloat16), diag2_ref[...],
                    preferred_element_type=jnp.float32)
        y = bn(y, g2_ref[...], be2_ref[...])

        # ---- residual add (identity shortcut) + ReLU ----
        o_ref[...] = jnp.maximum(y + x, 0.0)

    return kernel


def lbc_basic_block(x_nhwc, pk):
    """x_nhwc: (N, H, W, C) f32.  pk: packed params from pack_block_params()."""
    N, H, W, C = x_nhwc.shape
    NH, WC = N * H, W * C
    x_p = x_nhwc.reshape(NH, WC)           # lane-dense packed layout (c fastest)

    def full(shp):
        return pl.BlockSpec(shp, lambda *_, _n=len(shp): (0,) * _n)

    y_p = pl.pallas_call(
        make_kernel(N, H, W, C),
        out_shape=jax.ShapeDtypeStruct((NH, WC), jnp.float32),
        grid=(1,),
        in_specs=[
            full((NH, WC)),          # x (packed, f32)
            full((3, WC, WC)),       # band1 (bf16): per-kh kw+channel mixing, conv #1
            full((WC, WC)),          # diag1 (bf16): 1x1 conv #1 (block-diagonal)
            full((1, WC)),           # gamma1 (packed, f32)
            full((1, WC)),           # beta1
            full((3, WC, WC)),       # band2 (bf16)
            full((WC, WC)),          # diag2 (bf16)
            full((1, WC)),           # gamma2
            full((1, WC)),           # beta2
        ],
        out_specs=full((NH, WC)),
        input_output_aliases={0: 0},   # x and output share the (NH, WC) HBM buffer
        compiler_params=pltpu.CompilerParams(dimension_semantics=("arbitrary",)),
    )(x_p, pk["band1"], pk["diag1"], pk["g1"], pk["be1"],
      pk["band2"], pk["diag2"], pk["g2"], pk["be2"])

    return y_p.reshape(N, H, W, C)


# ------------------ parameter construction & packing ----------------------------

def make_lbc3x3_weight(key, cin, cout, sparsity=0.1):
    """zeros + floor(sparsity*numel) random +/-1 entries; returned in HWIO."""
    num = cout * cin * 9
    nnz = math.floor(sparsity * num)
    k_idx, k_sgn = jax.random.split(key)
    idx = jax.random.randint(k_idx, (nnz,), 0, num)
    sgn = jax.random.bernoulli(k_sgn, 0.5, (nnz,)).astype(jnp.float32) * 2.0 - 1.0
    flat = jnp.zeros((num,), jnp.float32).at[idx].set(sgn)
    w_oihw = flat.reshape(cout, cin, 3, 3)
    return jnp.transpose(w_oihw, (2, 3, 1, 0))        # HWIO


def pack_block_params(p, N, H, W, C):
    """Repack weights for the lane-dense (N*H, W*C) kernel layout (weight plumbing)."""
    WC = W * C

    def band(w_hwio):                     # (3,3,Cin,Cout) -> (3, WC, WC) bf16
        # Ternary (+-1/0) weights are exact in bf16.
        w = np.asarray(w_hwio, np.float32)
        B = np.zeros((3, WC, WC), np.float32)
        for kh in range(3):
            for wo in range(W):
                for kw in range(3):
                    wi = wo + kw - 1
                    if 0 <= wi < W:
                        B[kh, wi * C:(wi + 1) * C, wo * C:(wo + 1) * C] = w[kh, kw]
        return jnp.asarray(B, jnp.bfloat16)

    def blockdiag(w_cc):                  # (Cin,Cout) -> (WC, WC) bf16
        w = np.asarray(w_cc, np.float32)
        D = np.zeros((WC, WC), np.float32)
        for wi in range(W):
            D[wi * C:(wi + 1) * C, wi * C:(wi + 1) * C] = w
        return jnp.asarray(D, jnp.bfloat16)

    def tile_c(v):                        # (C,) or (1,C) -> (1, WC), c fastest
        v = np.asarray(v, np.float32).reshape(-1)
        return jnp.asarray(np.tile(v, W)[None, :])

    return dict(
        band1=band(p["w1a"]), diag1=blockdiag(p["w1b"]),
        g1=tile_c(p["g1"]), be1=tile_c(p["be1"]),
        band2=band(p["w2a"]), diag2=blockdiag(p["w2b"]),
        g2=tile_c(p["g2"]), be2=tile_c(p["be2"]),
    )


# ---------------- pure-JAX reference (f32, includes the 1x1 biases) --------------

def ref_forward(x_nhwc, p):
    def conv3x3(x, w):
        return jax.lax.conv_general_dilated(
            x, w, window_strides=(1, 1), padding="SAME",
            dimension_numbers=("NHWC", "HWIO", "NHWC"))

    def bn(y, g, b, eps=1e-5):
        mu = jnp.mean(y, axis=(0, 1, 2), keepdims=True)
        var = jnp.mean((y - mu) ** 2, axis=(0, 1, 2), keepdims=True)
        return (y - mu) * jax.lax.rsqrt(var + eps) * g + b

    y = conv3x3(x_nhwc, p["w1a"])
    y = jnp.maximum(y, 0.0)
    y = jnp.einsum("nhwc,cd->nhwd", y, p["w1b"]) + p["b1"]
    y = bn(y, p["g1"], p["be1"])
    y = conv3x3(y, p["w2a"])
    y = jnp.maximum(y, 0.0)
    y = jnp.einsum("nhwc,cd->nhwd", y, p["w2b"]) + p["b2"]
    y = bn(y, p["g2"], p["be2"])
    return jnp.maximum(y + x_nhwc, 0.0)


if __name__ == "__main__":
    # Small config: in_planes = planes = 8, stride = 1, shortcut = None.
    N, C, H, W = 2, 8, 16, 16
    key = jax.random.PRNGKey(0)
    ks = jax.random.split(key, 8)

    x_nchw = jax.random.normal(ks[0], (N, C, H, W), jnp.float32)   # PyTorch layout
    params = dict(
        w1a=make_lbc3x3_weight(ks[1], C, C, sparsity=0.1),
        w1b=0.1 * jax.random.normal(ks[2], (C, C), jnp.float32),
        b1=0.1 * jax.random.normal(ks[3], (1, C), jnp.float32),
        g1=jnp.ones((C,), jnp.float32),
        be1=jnp.zeros((C,), jnp.float32),
        w2a=make_lbc3x3_weight(ks[4], C, C, sparsity=0.1),
        w2b=0.1 * jax.random.normal(ks[5], (C, C), jnp.float32),
        b2=0.1 * jax.random.normal(ks[6], (1, C), jnp.float32),
        g2=jnp.ones((C,), jnp.float32),
        be2=jnp.zeros((C,), jnp.float32),
    )

    x_nhwc = jnp.transpose(x_nchw, (0, 2, 3, 1))                   # NCHW -> NHWC
    packed = pack_block_params(params, N, H, W, C)

    y = lbc_basic_block(x_nhwc, packed)
    y = jax.block_until_ready(y)

    y_ref = ref_forward(x_nhwc, params)
    # Remaining mismatch vs. the pure-f32 reference is only the deliberate bf16 MXU
    # operands (shifts / BN stats are now exact f32) -> modest tolerance.
    np.testing.assert_allclose(np.asarray(y), np.asarray(y_ref), rtol=3e-2, atol=3e-2)

    print("KERNEL_OK")
</pallas_src>

<mosaic_0001>
module attributes {stable_mosaic.version = 11 : i64} {
  func.func @kernel(%arg0: i32, %arg1: memref<32x128xf32, #tpu.memory_space<vmem>>, %arg2: memref<3x128x128xbf16, #tpu.memory_space<vmem>>, %arg3: memref<128x128xbf16, #tpu.memory_space<vmem>>, %arg4: memref<1x128xf32, #tpu.memory_space<vmem>>, %arg5: memref<1x128xf32, #tpu.memory_space<vmem>>, %arg6: memref<3x128x128xbf16, #tpu.memory_space<vmem>>, %arg7: memref<128x128xbf16, #tpu.memory_space<vmem>>, %arg8: memref<1x128xf32, #tpu.memory_space<vmem>>, %arg9: memref<1x128xf32, #tpu.memory_space<vmem>>, %arg10: memref<32x128xf32, #tpu.memory_space<vmem>>) attributes {dimension_semantics = [#tpu.dimension_semantics<arbitrary>], iteration_bounds = array<i64: 1>, scalar_prefetch = 0 : i64, scratch_operands = 0 : i64, tpu.core_type = #tpu.core_type<tc>, window_params = [{pipeline_mode = #tpu.pipeline_mode<synchronous>, transform_indices = @transform_0, window_bounds = array<i64: 32, 128>}, {pipeline_mode = #tpu.pipeline_mode<synchronous>, transform_indices = @transform_1, window_bounds = array<i64: 3, 128, 128>}, {pipeline_mode = #tpu.pipeline_mode<synchronous>, transform_indices = @transform_2, window_bounds = array<i64: 128, 128>}, {pipeline_mode = #tpu.pipeline_mode<synchronous>, transform_indices = @transform_3, window_bounds = array<i64: 1, 128>}, {pipeline_mode = #tpu.pipeline_mode<synchronous>, transform_indices = @transform_4, window_bounds = array<i64: 1, 128>}, {pipeline_mode = #tpu.pipeline_mode<synchronous>, transform_indices = @transform_5, window_bounds = array<i64: 3, 128, 128>}, {pipeline_mode = #tpu.pipeline_mode<synchronous>, transform_indices = @transform_6, window_bounds = array<i64: 128, 128>}, {pipeline_mode = #tpu.pipeline_mode<synchronous>, transform_indices = @transform_7, window_bounds = array<i64: 1, 128>}, {pipeline_mode = #tpu.pipeline_mode<synchronous>, transform_indices = @transform_8, window_bounds = array<i64: 1, 128>}, {pipeline_mode = #tpu.pipeline_mode<synchronous>, transform_indices = @transform_9, window_bounds = array<i64: 32, 128>}]} {
    %c0 = arith.constant 0 : index
    %c0_0 = arith.constant 0 : index
    %0 = vector.load %arg1[%c0, %c0_0] : memref<32x128xf32, #tpu.memory_space<vmem>>, vector<32x128xf32>
    %1 = tpu.iota {dimensions = array<i32: 0>} : vector<32x128xi32>
    %c16_i32 = arith.constant 16 : i32
    %c0_i32 = arith.constant 0 : i32
    %2 = arith.cmpi eq, %c16_i32, %c0_i32 : i32
    %c1_i32 = arith.constant 1 : i32
    %3 = arith.select %2, %c1_i32, %c16_i32 : i32
    %4 = vector.broadcast %3 : i32 to vector<32x128xi32>
    %5 = arith.remsi %1, %4 : vector<32x128xi32>
    %c0_i32_1 = arith.constant 0 : i32
    %6 = vector.broadcast %c0_i32_1 : i32 to vector<32x128xi32>
    %7 = arith.cmpi ne, %5, %6 : vector<32x128xi32>
    %c0_i32_2 = arith.constant 0 : i32
    %8 = vector.broadcast %c0_i32_2 : i32 to vector<32x128xi32>
    %9 = arith.cmpi slt, %5, %8 : vector<32x128xi32>
    %c0_i32_3 = arith.constant 0 : i32
    %10 = arith.cmpi slt, %3, %c0_i32_3 : i32
    %11 = vector.broadcast %10 : i1 to vector<32x128xi1>
    %12 = vector.broadcast %11 : vector<32x128xi1> to vector<32x128xi1>
    %13 = arith.xori %9, %12 : vector<32x128xi1>
    %14 = arith.andi %13, %7 : vector<32x128xi1>
    %15 = vector.broadcast %3 : i32 to vector<32x128xi32>
    %16 = arith.addi %5, %15 : vector<32x128xi32>
    %17 = arith.select %14, %16, %5 : vector<32x128xi1>, vector<32x128xi32>
    %c0_i32_4 = arith.constant 0 : i32
    %18 = vector.broadcast %c0_i32_4 : i32 to vector<32x128xi32>
    %19 = arith.cmpi eq, %17, %18 : vector<32x128xi32>
    %c15_i32 = arith.constant 15 : i32
    %20 = vector.broadcast %c15_i32 : i32 to vector<32x128xi32>
    %21 = arith.cmpi eq, %17, %20 : vector<32x128xi32>
    %c1_i32_5 = arith.constant 1 : i32
    %22 = tpu.dynamic_rotate %0 by %c1_i32_5 dim 0 : vector<32x128xf32>, i32 -> vector<32x128xf32>
    %cst = arith.constant 0.000000e+00 : f32
    %23 = vector.broadcast %cst : f32 to vector<32x128xf32>
    %24 = arith.select %19, %23, %22 : vector<32x128xi1>, vector<32x128xf32>
    %c31_i32 = arith.constant 31 : i32
    %25 = tpu.dynamic_rotate %0 by %c31_i32 dim 0 : vector<32x128xf32>, i32 -> vector<32x128xf32>
    %cst_6 = arith.constant 0.000000e+00 : f32
    %26 = vector.broadcast %cst_6 : f32 to vector<32x128xf32>
    %27 = arith.select %21, %26, %25 : vector<32x128xi1>, vector<32x128xf32>
    %28 = arith.truncf %24 : vector<32x128xf32> to vector<32x128xbf16>
    %c0_7 = arith.constant 0 : index
    %c0_8 = arith.constant 0 : index
    %c0_9 = arith.constant 0 : index
    %29 = vector.load %arg2[%c0_7, %c0_8, %c0_9] : memref<3x128x128xbf16, #tpu.memory_space<vmem>>, vector<1x128x128xbf16>
    %30 = vector.shape_cast %29 : vector<1x128x128xbf16> to vector<128x128xbf16>
    %cst_10 = arith.constant dense<0.000000e+00> : vector<32x128xf32>
    %31 = tpu.matmul %28, %30, %cst_10 {dimension_numbers = #tpu.dot_dimension_numbers<[1], [0], [0], [1], [0, 0, 1, 1], [], []>} : vector<32x128xbf16>, vector<128x128xbf16>, vector<32x128xf32> -> vector<32x128xf32>
    %32 = arith.truncf %0 : vector<32x128xf32> to vector<32x128xbf16>
    %c1 = arith.constant 1 : index
    %c0_11 = arith.constant 0 : index
    %c0_12 = arith.constant 0 : index
    %33 = vector.load %arg2[%c1, %c0_11, %c0_12] : memref<3x128x128xbf16, #tpu.memory_space<vmem>>, vector<1x128x128xbf16>
    %34 = vector.shape_cast %33 : vector<1x128x128xbf16> to vector<128x128xbf16>
    %cst_13 = arith.constant dense<0.000000e+00> : vector<32x128xf32>
    %35 = tpu.matmul %32, %34, %cst_13 {dimension_numbers = #tpu.dot_dimension_numbers<[1], [0], [0], [1], [0, 0, 1, 1], [], []>} : vector<32x128xbf16>, vector<128x128xbf16>, vector<32x128xf32> -> vector<32x128xf32>
    %36 = arith.addf %31, %35 : vector<32x128xf32>
    %37 = arith.truncf %27 : vector<32x128xf32> to vector<32x128xbf16>
    %c2 = arith.constant 2 : index
    %c0_14 = arith.constant 0 : index
    %c0_15 = arith.constant 0 : index
    %38 = vector.load %arg2[%c2, %c0_14, %c0_15] : memref<3x128x128xbf16, #tpu.memory_space<vmem>>, vector<1x128x128xbf16>
    %39 = vector.shape_cast %38 : vector<1x128x128xbf16> to vector<128x128xbf16>
    %cst_16 = arith.constant dense<0.000000e+00> : vector<32x128xf32>
    %40 = tpu.matmul %37, %39, %cst_16 {dimension_numbers = #tpu.dot_dimension_numbers<[1], [0], [0], [1], [0, 0, 1, 1], [], []>} : vector<32x128xbf16>, vector<128x128xbf16>, vector<32x128xf32> -> vector<32x128xf32>
    %41 = arith.addf %36, %40 : vector<32x128xf32>
    %cst_17 = arith.constant 0.000000e+00 : f32
    %42 = vector.broadcast %cst_17 : f32 to vector<32x128xf32>
    %43 = arith.maximumf %41, %42 : vector<32x128xf32>
    %44 = arith.truncf %43 : vector<32x128xf32> to vector<32x128xbf16>
    %c0_18 = arith.constant 0 : index
    %c0_19 = arith.constant 0 : index
    %45 = vector.load %arg3[%c0_18, %c0_19] : memref<128x128xbf16, #tpu.memory_space<vmem>>, vector<128x128xbf16>
    %cst_20 = arith.constant dense<0.000000e+00> : vector<32x128xf32>
    %46 = tpu.matmul %44, %45, %cst_20 {dimension_numbers = #tpu.dot_dimension_numbers<[1], [0], [0], [1], [0, 0, 1, 1], [], []>} : vector<32x128xbf16>, vector<128x128xbf16>, vector<32x128xf32> -> vector<32x128xf32>
    %c0_21 = arith.constant 0 : index
    %c0_22 = arith.constant 0 : index
    %47 = vector.load %arg4[%c0_21, %c0_22] : memref<1x128xf32, #tpu.memory_space<vmem>>, vector<1x128xf32>
    %c0_23 = arith.constant 0 : index
    %c0_24 = arith.constant 0 : index
    %48 = vector.load %arg5[%c0_23, %c0_24] : memref<1x128xf32, #tpu.memory_space<vmem>>, vector<1x128xf32>
    %49 = arith.mulf %46, %46 : vector<32x128xf32>
    %50 = tpu.concatenate %46, %49 in 1 : vector<32x128xf32>, vector<32x128xf32> -> vector<32x256xf32>
    %cst_25 = arith.constant dense<0.000000e+00> : vector<256xf32>
    %51 = vector.multi_reduction <add>, %50, %cst_25 [0] : vector<32x256xf32> to vector<256xf32>
    %52 = vector.shape_cast %51 : vector<256xf32> to vector<1x256xf32>
    %53 = vector.extract_strided_slice %52 {offsets = [0, 0], sizes = [1, 128], strides = [1, 1]} : vector<1x256xf32> to vector<1x128xf32>
    %54 = vector.extract_strided_slice %52 {offsets = [0, 128], sizes = [1, 128], strides = [1, 1]} : vector<1x256xf32> to vector<1x128xf32>
    %55 = tpu.concatenate %53, %54 in 0 : vector<1x128xf32>, vector<1x128xf32> -> vector<2x128xf32>
    %c8_i32 = arith.constant 8 : i32
    %56 = tpu.dynamic_rotate %55 by %c8_i32 dim 1 : vector<2x128xf32>, i32 -> vector<2x128xf32>
    %57 = arith.addf %55, %56 : vector<2x128xf32>
    %c16_i32_26 = arith.constant 16 : i32
    %58 = tpu.dynamic_rotate %57 by %c16_i32_26 dim 1 : vector<2x128xf32>, i32 -> vector<2x128xf32>
    %59 = arith.addf %57, %58 : vector<2x128xf32>
    %c32_i32 = arith.constant 32 : i32
    %60 = tpu.dynamic_rotate %59 by %c32_i32 dim 1 : vector<2x128xf32>, i32 -> vector<2x128xf32>
    %61 = arith.addf %59, %60 : vector<2x128xf32>
    %c64_i32 = arith.constant 64 : i32
    %62 = tpu.dynamic_rotate %61 by %c64_i32 dim 1 : vector<2x128xf32>, i32 -> vector<2x128xf32>
    %63 = arith.addf %61, %62 : vector<2x128xf32>
    %64 = vector.extract_strided_slice %63 {offsets = [0, 0], sizes = [1, 128], strides = [1, 1]} : vector<2x128xf32> to vector<1x128xf32>
    %cst_27 = arith.constant 0.001953125 : f32
    %65 = vector.broadcast %cst_27 : f32 to vector<1x128xf32>
    %66 = arith.mulf %64, %65 : vector<1x128xf32>
    %67 = vector.extract_strided_slice %63 {offsets = [1, 0], sizes = [1, 128], strides = [1, 1]} : vector<2x128xf32> to vector<1x128xf32>
    %cst_28 = arith.constant 0.001953125 : f32
    %68 = vector.broadcast %cst_28 : f32 to vector<1x128xf32>
    %69 = arith.mulf %67, %68 : vector<1x128xf32>
    %70 = arith.mulf %66, %66 : vector<1x128xf32>
    %71 = arith.subf %69, %70 : vector<1x128xf32>
    %72 = vector.broadcast %66 : vector<1x128xf32> to vector<32x128xf32>
    %73 = arith.subf %46, %72 : vector<32x128xf32>
    %cst_29 = arith.constant 9.99999974E-6 : f32
    %74 = vector.broadcast %cst_29 : f32 to vector<1x128xf32>
    %75 = arith.addf %71, %74 : vector<1x128xf32>
    %76 = math.rsqrt %75 : vector<1x128xf32>
    %77 = arith.mulf %76, %47 : vector<1x128xf32>
    %78 = vector.broadcast %77 : vector<1x128xf32> to vector<32x128xf32>
    %79 = arith.mulf %73, %78 : vector<32x128xf32>
    %80 = vector.broadcast %48 : vector<1x128xf32> to vector<32x128xf32>
    %81 = arith.addf %79, %80 : vector<32x128xf32>
    %c1_i32_30 = arith.constant 1 : i32
    %82 = tpu.dynamic_rotate %81 by %c1_i32_30 dim 0 : vector<32x128xf32>, i32 -> vector<32x128xf32>
    %cst_31 = arith.constant 0.000000e+00 : f32
    %83 = vector.broadcast %cst_31 : f32 to vector<32x128xf32>
    %84 = arith.select %19, %83, %82 : vector<32x128xi1>, vector<32x128xf32>
    %c31_i32_32 = arith.constant 31 : i32
    %85 = tpu.dynamic_rotate %81 by %c31_i32_32 dim 0 : vector<32x128xf32>, i32 -> vector<32x128xf32>
    %cst_33 = arith.constant 0.000000e+00 : f32
    %86 = vector.broadcast %cst_33 : f32 to vector<32x128xf32>
    %87 = arith.select %21, %86, %85 : vector<32x128xi1>, vector<32x128xf32>
    %88 = arith.truncf %84 : vector<32x128xf32> to vector<32x128xbf16>
    %c0_34 = arith.constant 0 : index
    %c0_35 = arith.constant 0 : index
    %c0_36 = arith.constant 0 : index
    %89 = vector.load %arg6[%c0_34, %c0_35, %c0_36] : memref<3x128x128xbf16, #tpu.memory_space<vmem>>, vector<1x128x128xbf16>
    %90 = vector.shape_cast %89 : vector<1x128x128xbf16> to vector<128x128xbf16>
    %cst_37 = arith.constant dense<0.000000e+00> : vector<32x128xf32>
    %91 = tpu.matmul %88, %90, %cst_37 {dimension_numbers = #tpu.dot_dimension_numbers<[1], [0], [0], [1], [0, 0, 1, 1], [], []>} : vector<32x128xbf16>, vector<128x128xbf16>, vector<32x128xf32> -> vector<32x128xf32>
    %92 = arith.truncf %81 : vector<32x128xf32> to vector<32x128xbf16>
    %c1_38 = arith.constant 1 : index
    %c0_39 = arith.constant 0 : index
    %c0_40 = arith.constant 0 : index
    %93 = vector.load %arg6[%c1_38, %c0_39, %c0_40] : memref<3x128x128xbf16, #tpu.memory_space<vmem>>, vector<1x128x128xbf16>
    %94 = vector.shape_cast %93 : vector<1x128x128xbf16> to vector<128x128xbf16>
    %cst_41 = arith.constant dense<0.000000e+00> : vector<32x128xf32>
    %95 = tpu.matmul %92, %94, %cst_41 {dimension_numbers = #tpu.dot_dimension_numbers<[1], [0], [0], [1], [0, 0, 1, 1], [], []>} : vector<32x128xbf16>, vector<128x128xbf16>, vector<32x128xf32> -> vector<32x128xf32>
    %96 = arith.addf %91, %95 : vector<32x128xf32>
    %97 = arith.truncf %87 : vector<32x128xf32> to vector<32x128xbf16>
    %c2_42 = arith.constant 2 : index
    %c0_43 = arith.constant 0 : index
    %c0_44 = arith.constant 0 : index
    %98 = vector.load %arg6[%c2_42, %c0_43, %c0_44] : memref<3x128x128xbf16, #tpu.memory_space<vmem>>, vector<1x128x128xbf16>
    %99 = vector.shape_cast %98 : vector<1x128x128xbf16> to vector<128x128xbf16>
    %cst_45 = arith.constant dense<0.000000e+00> : vector<32x128xf32>
    %100 = tpu.matmul %97, %99, %cst_45 {dimension_numbers = #tpu.dot_dimension_numbers<[1], [0], [0], [1], [0, 0, 1, 1], [], []>} : vector<32x128xbf16>, vector<128x128xbf16>, vector<32x128xf32> -> vector<32x128xf32>
    %101 = arith.addf %96, %100 : vector<32x128xf32>
    %cst_46 = arith.constant 0.000000e+00 : f32
    %102 = vector.broadcast %cst_46 : f32 to vector<32x128xf32>
    %103 = arith.maximumf %101, %102 : vector<32x128xf32>
    %104 = arith.truncf %103 : vector<32x128xf32> to vector<32x128xbf16>
    %c0_47 = arith.constant 0 : index
    %c0_48 = arith.constant 0 : index
    %105 = vector.load %arg7[%c0_47, %c0_48] : memref<128x128xbf16, #tpu.memory_space<vmem>>, vector<128x128xbf16>
    %cst_49 = arith.constant dense<0.000000e+00> : vector<32x128xf32>
    %106 = tpu.matmul %104, %105, %cst_49 {dimension_numbers = #tpu.dot_dimension_numbers<[1], [0], [0], [1], [0, 0, 1, 1], [], []>} : vector<32x128xbf16>, vector<128x128xbf16>, vector<32x128xf32> -> vector<32x128xf32>
    %c0_50 = arith.constant 0 : index
    %c0_51 = arith.constant 0 : index
    %107 = vector.load %arg8[%c0_50, %c0_51] : memref<1x128xf32, #tpu.memory_space<vmem>>, vector<1x128xf32>
    %c0_52 = arith.constant 0 : index
    %c0_53 = arith.constant 0 : index
    %108 = vector.load %arg9[%c0_52, %c0_53] : memref<1x128xf32, #tpu.memory_space<vmem>>, vector<1x128xf32>
    %109 = arith.mulf %106, %106 : vector<32x128xf32>
    %110 = tpu.concatenate %106, %109 in 1 : vector<32x128xf32>, vector<32x128xf32> -> vector<32x256xf32>
    %cst_54 = arith.constant dense<0.000000e+00> : vector<256xf32>
    %111 = vector.multi_reduction <add>, %110, %cst_54 [0] : vector<32x256xf32> to vector<256xf32>
    %112 = vector.shape_cast %111 : vector<256xf32> to vector<1x256xf32>
    %113 = vector.extract_strided_slice %112 {offsets = [0, 0], sizes = [1, 128], strides = [1, 1]} : vector<1x256xf32> to vector<1x128xf32>
    %114 = vector.extract_strided_slice %112 {offsets = [0, 128], sizes = [1, 128], strides = [1, 1]} : vector<1x256xf32> to vector<1x128xf32>
    %115 = tpu.concatenate %113, %114 in 0 : vector<1x128xf32>, vector<1x128xf32> -> vector<2x128xf32>
    %c8_i32_55 = arith.constant 8 : i32
    %116 = tpu.dynamic_rotate %115 by %c8_i32_55 dim 1 : vector<2x128xf32>, i32 -> vector<2x128xf32>
    %117 = arith.addf %115, %116 : vector<2x128xf32>
    %c16_i32_56 = arith.constant 16 : i32
    %118 = tpu.dynamic_rotate %117 by %c16_i32_56 dim 1 : vector<2x128xf32>, i32 -> vector<2x128xf32>
    %119 = arith.addf %117, %118 : vector<2x128xf32>
    %c32_i32_57 = arith.constant 32 : i32
    %120 = tpu.dynamic_rotate %119 by %c32_i32_57 dim 1 : vector<2x128xf32>, i32 -> vector<2x128xf32>
    %121 = arith.addf %119, %120 : vector<2x128xf32>
    %c64_i32_58 = arith.constant 64 : i32
    %122 = tpu.dynamic_rotate %121 by %c64_i32_58 dim 1 : vector<2x128xf32>, i32 -> vector<2x128xf32>
    %123 = arith.addf %121, %122 : vector<2x128xf32>
    %124 = vector.extract_strided_slice %123 {offsets = [0, 0], sizes = [1, 128], strides = [1, 1]} : vector<2x128xf32> to vector<1x128xf32>
    %cst_59 = arith.constant 0.001953125 : f32
    %125 = vector.broadcast %cst_59 : f32 to vector<1x128xf32>
    %126 = arith.mulf %124, %125 : vector<1x128xf32>
    %127 = vector.extract_strided_slice %123 {offsets = [1, 0], sizes = [1, 128], strides = [1, 1]} : vector<2x128xf32> to vector<1x128xf32>
    %cst_60 = arith.constant 0.001953125 : f32
    %128 = vector.broadcast %cst_60 : f32 to vector<1x128xf32>
    %129 = arith.mulf %127, %128 : vector<1x128xf32>
    %130 = arith.mulf %126, %126 : vector<1x128xf32>
    %131 = arith.subf %129, %130 : vector<1x128xf32>
    %132 = vector.broadcast %126 : vector<1x128xf32> to vector<32x128xf32>
    %133 = arith.subf %106, %132 : vector<32x128xf32>
    %cst_61 = arith.constant 9.99999974E-6 : f32
    %134 = vector.broadcast %cst_61 : f32 to vector<1x128xf32>
    %135 = arith.addf %131, %134 : vector<1x128xf32>
    %136 = math.rsqrt %135 : vector<1x128xf32>
    %137 = arith.mulf %136, %107 : vector<1x128xf32>
    %138 = vector.broadcast %137 : vector<1x128xf32> to vector<32x128xf32>
    %139 = arith.mulf %133, %138 : vector<32x128xf32>
    %140 = vector.broadcast %108 : vector<1x128xf32> to vector<32x128xf32>
    %141 = arith.addf %139, %140 : vector<32x128xf32>
    %142 = arith.addf %141, %0 : vector<32x128xf32>
    %cst_62 = arith.constant 0.000000e+00 : f32
    %143 = vector.broadcast %cst_62 : f32 to vector<32x128xf32>
    %144 = arith.maximumf %142, %143 : vector<32x128xf32>
    %c0_63 = arith.constant 0 : index
    %c0_64 = arith.constant 0 : index
    %145 = vector.load %arg10[%c0_63, %c0_64] : memref<32x128xf32, #tpu.memory_space<vmem>>, vector<32x128xf32>
    tpu.vector_store %arg10[%c0_63, %c0_64], %144 {strides = array<i32>} : memref<32x128xf32, #tpu.memory_space<vmem>>, vector<32x128xf32>,
    return
  }
  func.func @transform_0(%arg0: i32) -> (i32, i32) {
    %c0_i32 = arith.constant 0 : i32
    %c0_i32_0 = arith.constant 0 : i32
    %c0_i32_1 = arith.constant 0 : i32
    return %c0_i32, %c0_i32_0 : i32, i32
  }
  func.func @transform_1(%arg0: i32) -> (i32, i32, i32) {
    %c0_i32 = arith.constant 0 : i32
    %c0_i32_0 = arith.constant 0 : i32
    %c0_i32_1 = arith.constant 0 : i32
    %c0_i32_2 = arith.constant 0 : i32
    return %c0_i32, %c0_i32_0, %c0_i32_1 : i32, i32, i32
  }
  func.func @transform_2(%arg0: i32) -> (i32, i32) {
    %c0_i32 = arith.constant 0 : i32
    %c0_i32_0 = arith.constant 0 : i32
    %c0_i32_1 = arith.constant 0 : i32
    return %c0_i32, %c0_i32_0 : i32, i32
  }
  func.func @transform_3(%arg0: i32) -> (i32, i32) {
    %c0_i32 = arith.constant 0 : i32
    %c0_i32_0 = arith.constant 0 : i32
    %c0_i32_1 = arith.constant 0 : i32
    return %c0_i32, %c0_i32_0 : i32, i32
  }
  func.func @transform_4(%arg0: i32) -> (i32, i32) {
    %c0_i32 = arith.constant 0 : i32
    %c0_i32_0 = arith.constant 0 : i32
    %c0_i32_1 = arith.constant 0 : i32
    return %c0_i32, %c0_i32_0 : i32, i32
  }
  func.func @transform_5(%arg0: i32) -> (i32, i32, i32) {
    %c0_i32 = arith.constant 0 : i32
    %c0_i32_0 = arith.constant 0 : i32
    %c0_i32_1 = arith.constant 0 : i32
    %c0_i32_2 = arith.constant 0 : i32
    return %c0_i32, %c0_i32_0, %c0_i32_1 : i32, i32, i32
  }
  func.func @transform_6(%arg0: i32) -> (i32, i32) {
    %c0_i32 = arith.constant 0 : i32
    %c0_i32_0 = arith.constant 0 : i32
    %c0_i32_1 = arith.constant 0 : i32
    return %c0_i32, %c0_i32_0 : i32, i32
  }
  func.func @transform_7(%arg0: i32) -> (i32, i32) {
    %c0_i32 = arith.constant 0 : i32
    %c0_i32_0 = arith.constant 0 : i32
    %c0_i32_1 = arith.constant 0 : i32
    return %c0_i32, %c0_i32_0 : i32, i32
  }
  func.func @transform_8(%arg0: i32) -> (i32, i32) {
    %c0_i32 = arith.constant 0 : i32
    %c0_i32_0 = arith.constant 0 : i32
    %c0_i32_1 = arith.constant 0 : i32
    return %c0_i32, %c0_i32_0 : i32, i32
  }
  func.func @transform_9(%arg0: i32) -> (i32, i32) {
    %c0_i32 = arith.constant 0 : i32
    %c0_i32_0 = arith.constant 0 : i32
    %c0_i32_1 = arith.constant 0 : i32
    return %c0_i32, %c0_i32_0 : i32, i32
  }
}

</mosaic_0001>

<bundles_post_ra>
// kernel: tpu_custom_call.1
= control target key start
LH: loop header
LB: loop body
LE: loop exit
PB: predicated region body
PF: predicated region fallthrough
CT: control target
= control target key end

     0   :  { %14 = vsyncpa [#allocation3], 0  ;;  %s1876_s0 = inlined_call_operand.hbm [shape: f32[32,128], index: 0, kind: input, shape index: {}, may-alias: {0,9}]   ;;  %s1877_s1 = inlined_call_operand.hbm [shape: bf16[3,128,128], index: 1, kind: input, shape index: {}]   ;;  %s1878_s2 = inlined_call_operand.vmem [shape: bf16[128,128], index: 2, kind: input, shape index: {}]   ;;  %s1879_s3 = inlined_call_operand.vmem [shape: f32[1,128], index: 3, kind: input, shape index: {}]   ;;  %s1880_s4 = inlined_call_operand.vmem [shape: f32[1,128], index: 4, kind: input, shape index: {}]   ;;  %s1881_s5 = inlined_call_operand.hbm [shape: bf16[3,128,128], index: 5, kind: input, shape index: {}]   ;;  %s1882_s6 = inlined_call_operand.hbm [shape: bf16[128,128], index: 6, kind: input, shape index: {}]   ;;  %s1883_s7 = inlined_call_operand.vmem [shape: f32[1,128], index: 7, kind: input, shape index: {}]   ;;  %s1884_s8 = inlined_call_operand.vmem [shape: f32[1,128], index: 8, kind: input, shape index: {}]   ;;  %s1885_s9 = inlined_call_operand.hbm [shape: f32[32,128], index: 9, kind: output, shape index: {}, may-alias: {0,9}]  }
   0x1   :  { %15 = vsyncpa [#allocation6], 0 }
   0x2   :  { %16 = vsyncpa [#allocation9], 0  ;;  %s35_s11 = sshll.u32 %s1877_s1, 4  ;;  %s36_s11 = int_to_ptr.hbm [resolvable:$true] %s35_s11 }
   0x3   :  { %17 = vsyncpa [#allocation4], 0  ;;  %s1599_s12 = smov [#allocation5]   ;;  %s22_s16 = sshll.u32 %s1876_s0, 4  ;;  %s23_s16 = int_to_ptr.hbm [resolvable:$true] %s22_s16 }
   0x4   :  { %s37_s13 = sshll.u32 %s1599_s12, 4  ;;  %s1600_s17 = smov 64   ;;  %s38_s13 = int_to_ptr.vmem [resolvable:$true] %s37_s13 }
   0x5   :  { %s1601_s18 = smov 4   ;;  %s1602_s19 = smov [#allocation2]  }
   0x6   :  { %43 = dma.hbm_to_vmem [thread:$0]  %s36_s11, 3072, %s38_s13, [#allocation6], %s1600_s17, %s1600_s17, %s1601_s18  }
   0x7   :  { %s24_s20 = sshll.u32 %s1602_s19, 4  ;;  %s1603_s21 = smov 128   ;;  %s25_s20 = int_to_ptr.vmem [resolvable:$true] %s24_s20 }
   0x8   :  { %s1604_s1 = smov 8   ;;  %s54_s24 = sshll.u32 %s1881_s5, 4  ;;  %s55_s24 = int_to_ptr.hbm [resolvable:$true] %s54_s24 }
   0x9   :  { %30 = dma.hbm_to_vmem [thread:$0]  %s23_s16, 512, %s25_s20, [#allocation3], %s1603_s21, %s1603_s21, %s1604_s1  }
   0xa   :  { %s1605_s0 = smov [#allocation7]   ;;  %s67_s28 = sshll.u32 %s1882_s6, 4  ;;  %s68_s28 = int_to_ptr.hbm [resolvable:$true] %s67_s28 }
   0xb   :  { %s56_s25 = sshll.u32 %s1605_s0, 4  ;;  %s1606_s29 = smov [#allocation8]   ;;  %s57_s25 = int_to_ptr.vmem [resolvable:$true] %s56_s25 }
   0xc   :  { %62 = dma.hbm_to_vmem [thread:$0]  %s55_s24, 3072, %s57_s25, [#allocation6], %s1600_s17, %s1600_s17, %s1601_s18  }
   0xd   :  { %s69_s30 = sshll.u32 %s1606_s29, 4  ;;  %s70_s30 = int_to_ptr.vmem [resolvable:$true] %s69_s30 }
   0xe   :  { %75 = dma.hbm_to_vmem [thread:$0]  %s68_s28, 1024, %s70_s30, [#allocation9], %s1600_s17, %s1600_s17, %s1601_s18  }
   0xf   :  { %1591 = dma.done.wait [#allocation3], 512  }
  0x10   :  { %1592 = vsyncadd [#allocation3], 4294966784 }
  0x11   :  { %1593 = dma.done.wait [#allocation6], 6144  }
  0x12   :  { %1594 = vsyncadd [#allocation6], 4294961152 }
  0x13   :  { %1595 = dma.done.wait [#allocation9], 1024  }
  0x14   :  { %1596 = vsyncadd [#allocation9], 4294966272  ;;  %v1398_v0 = vld [vmem:[#allocation5 + $0x78] sm:$0xff]  ;;  %v1397_v3 = vld [vmem:[#allocation5 + $0x70] sm:$0xff]  ;;  %v100_v12 = vlaneseq  ;;  %vm1607_vm4 = vmmov 1   ;;  %vm561_vm11 = vcmask 1040384  }
  0x15   :  { %v1390_v1 = vld [vmem:[#allocation5 + $0x38] sm:$0xff]  ;;  %272 = vmatpush.bf16.msra.mxu0 %v1398_v0  ;;  %v1389_v4 = vld [vmem:[#allocation5 + $0x30] sm:$0xff]  ;;  %v1396_v6 = vld [vmem:[#allocation5 + $0x68] sm:$0xff]  ;;  %s1609_s25 = smov 32   ;;  %s1080_s10 = sshll.u32 %s1885_s9, 4  ;;  %s1081_s10 = int_to_ptr.hbm [resolvable:$true] %s1080_s10 }
  0x16   :  { %v1406_v2 = vld [vmem:[#allocation5 + $0xb8] sm:$0xff]  ;;  %339 = vmatpush.bf16.msra.mxu1 %v1390_v1  ;;  %v1405_v5 = vld [vmem:[#allocation5 + $0xb0] sm:$0xff]  ;;  %v1388_v7 = vld [vmem:[#allocation5 + $0x28] sm:$0xff]  ;;  %v1682_v16 = vshrl.u32 %v100_v12, 7 }
  0x17   :  { %425 = vmatpush.bf16.msra.mxu2 %v1406_v2  ;;  %v1404_v8 = vld [vmem:[#allocation5 + $0xa8] sm:$0xff]  ;;  %v1395_v9 = vld [vmem:[#allocation5 + $0x60] sm:$0xff]  ;;  %v1394_v13 = vld [vmem:[#allocation5 + $0x58] sm:$0xff] }
  0x18   :  { %v1387_v10 = vld [vmem:[#allocation5 + $0x20] sm:$0xff]  ;;  %v1386_v14 = vld [vmem:[#allocation5 + $0x18] sm:$0xff]  ;;  %v1393_v17 = vld [vmem:[#allocation5 + $0x50] sm:$0xff]  ;;  %v102_v25 = vadd.s32 8, %v1682_v16  ;;  %v109_v29 = vand.u32 15, %v1682_v16  ;;  %vm165_vm0 = vcmp.lt.s32.totalorder %v1682_v16, 1 }
  0x19   :  { %273 = vmatpush.bf16.msra.mxu0 %v1397_v3  ;;  %v1403_v11 = vld [vmem:[#allocation5 + $0xa0] sm:$0xff]  ;;  %v1402_v15 = vld [vmem:[#allocation5 + $0x98] sm:$0xff]  ;;  %v1385_v18 = vld [vmem:[#allocation5 + $0x10] sm:$0xff]  ;;  %vm178_vm1 = vcmp.lt.s32.totalorder %v1682_v16, 7  ;;  %v103_v51 = vadd.s32 16, %v1682_v16  ;;  %v104_v52 = vadd.s32 24, %v1682_v16 }
  0x1a   :  { %340 = vmatpush.bf16.msra.mxu1 %v1389_v4  ;;  %v1401_v19 = vld [vmem:[#allocation5 + $0x90] sm:$0xff]  ;;  %v1414_v20 = vld [vmem:[%s1878_s2 + $0x38] sm:$0xff]  ;;  %v1687_v21 = vld [vmem:[#allocation2] sm:$0xff]  ;;  %v116_v37 = vand.u32 15, %v102_v25  ;;  %vm1447_vm2 = vcmp.ne.s32.totalorder %v109_v29, 0 }
  0x1b   :  { %426 = vmatpush.bf16.msra.mxu2 %v1405_v5  ;;  %v1689_v22 = vld [vmem:[#allocation2 + $0x8] sm:$0xff]  ;;  %v1691_v23 = vld [vmem:[#allocation2 + $0x18] sm:$0xff]  ;;  %v1693_v24 = vld [vmem:[#allocation2 + $0x10] sm:$0xff]  ;;  %518 = vmatpush.bf16.msra.mxu3 %v1414_v20  ;;  %v161_v30 = vrot.slane %v1687_v21, 7  ;;  %v174_v34 = vrot.slane %v1687_v21, 1  ;;  %v123_v54 = vand.u32 15, %v103_v51 }
  0x1c   :  { %v1413_v26 = vld [vmem:[%s1878_s2 + $0x30] sm:$0xff]  ;;  %v1392_v27 = vld [vmem:[#allocation5 + $0x48] sm:$0xff]  ;;  %v162_v31 = vrot.slane %v1689_v22, 7  ;;  %v164_v32 = vrot.slane %v1691_v23, 7  ;;  %v175_v35 = vrot.slane %v1689_v22, 1  ;;  %v176_v36 = vrot.slane %v1693_v24, 1  ;;  %vm1722_vm5 = vmpackc.low %vm1607_vm4, %vm1447_vm2 }
  0x1d   :  { %274 = vmatpush.bf16.msra.mxu0 %v1396_v6  ;;  %v1384_v28 = vld [vmem:[#allocation5 + $0x8] sm:$0xff]  ;;  %v1391_v39 = vld [vmem:[#allocation5 + $0x40] sm:$0xff]  ;;  %vm1449_vm3 = vcmp.ne.s32.totalorder %v116_v37, 15  ;;  %v205_v46 = vpack.c.bf16 %v1689_v22, %v1687_v21  ;;  %v163_v53 = vrot.slane %v1693_v24, 7  ;;  %v177_v55 = vrot.slane %v1691_v23, 1  ;;  %v1410_v3 = vld [vmem:[%s1878_s2 + $0x18] sm:$0xff] }
  0x1e   :  { %341 = vmatpush.bf16.msra.mxu1 %v1388_v7  ;;  %v1400_v33 = vld [vmem:[#allocation5 + $0x88] sm:$0xff]  ;;  %v1383_v40 = vld [vmem:[#allocation5] sm:$0xff]  ;;  %v168_v41 = vsel %vm165_vm0, %v161_v30, %v162_v31  ;;  %v169_v42 = vsel %vm165_vm0, %v164_v32, %v161_v30  ;;  %v180_v44 = vsel %vm178_vm1, %v175_v35, %v176_v36  ;;  %v181_v45 = vsel %vm178_vm1, %v174_v34, %v175_v35  ;;  %vm1727_vm6 = vmpackc.low %vm1449_vm3, %vm1607_vm4 }
  0x1f   :  { %427 = vmatpush.bf16.msra.mxu2 %v1404_v8  ;;  %519 = vmatpush.bf16.msra.mxu3 %v1413_v26  ;;  %v1412_v38 = vld [vmem:[%s1878_s2 + $0x28] sm:$0xff]  ;;  %v1399_v43 = vld [vmem:[#allocation5 + $0x80] sm:$0xff]  ;;  %v1161_v47 = vpack.c.bf16 %v168_v41, %v169_v42  ;;  %v1201_v49 = vpack.c.bf16 %v180_v44, %v181_v45  ;;  %v130_v56 = vand.u32 15, %v104_v52  ;;  %v166_v57 = vsel %vm165_vm0, %v163_v53, %v164_v32  ;;  %v1409_v4 = vld [vmem:[%s1878_s2 + $0x10] sm:$0xff] }
  0x20   :  { %v167_v58 = vsel %vm165_vm0, %v162_v31, %v163_v53  ;;  %vm1448_vm7 = vcmp.ne.s32.totalorder %v123_v54, 0  ;;  %v179_v59 = vsel %vm178_vm1, %v176_v36, %v177_v55  ;;  %v182_v60 = vsel %vm178_vm1, %v177_v55, %v174_v34  ;;  %v1411_v2 = vld [vmem:[%s1878_s2 + $0x20] sm:$0xff]  ;;  %v1408_v5 = vld [vmem:[%s1878_s2 + $0x8] sm:$0xff] }
  0x21   :  { %275 = vmatpush.bf16.msra.mxu0 %v1395_v9  ;;  %vm1450_vm8 = vcmp.ne.s32.totalorder %v130_v56, 15  ;;  %v206_v61 = vpack.c.bf16 %v1691_v23, %v1693_v24  ;;  %v1165_v62 = vpack.c.bf16 %v166_v57, %v167_v58  ;;  %vm1750_vm9 = vmpackc.low %vm1607_vm4, %vm1448_vm7  ;;  %v1205_v0 = vpack.c.bf16 %v182_v60, %v179_v59  ;;  %v1407_v6 = vld [vmem:[%s1878_s2] sm:$0xff]  ;;  %s1608_s2 = smov 16   ;;  %v1444_v50 = vld [vmem:[#allocation8 + $0x28] sm:$0xff] }
  0x22   :  { %342 = vmatpush.bf16.msra.mxu1 %v1387_v10  ;;  %vm1755_vm10 = vmpackc.low %vm1450_vm8, %vm1607_vm4  ;;  %v1439_v16 = vld [vmem:[#allocation8] sm:$0xff] }
  0x23   :  { %428 = vmatpush.bf16.msra.mxu2 %v1403_v11  ;;  %520 = vmatpush.bf16.msra.mxu3 %v1412_v38 }
  0x25   :  { %276 = vmatpush.bf16.msra.mxu0 %v1394_v13 }
  0x26   :  { %343 = vmatpush.bf16.msra.mxu1 %v1386_v14 }
  0x27   :  { %429 = vmatpush.bf16.msra.mxu2 %v1402_v15  ;;  %521 = vmatpush.bf16.msra.mxu3 %v1411_v2 }
  0x29   :  { %277 = vmatpush.bf16.msra.mxu0 %v1393_v17 }
  0x2a   :  { %344 = vmatpush.bf16.msra.mxu1 %v1385_v18 }
  0x2b   :  { %430 = vmatpush.bf16.msra.mxu2 %v1401_v19  ;;  %522 = vmatpush.bf16.msra.mxu3 %v1410_v3 }
  0x2d   :  { %278 = vmatpush.bf16.msra.mxu0 %v1392_v27 }
  0x2e   :  { %345 = vmatpush.bf16.msra.mxu1 %v1384_v28 }
  0x2f   :  { %431 = vmatpush.bf16.msra.mxu2 %v1400_v33  ;;  %523 = vmatpush.bf16.msra.mxu3 %v1409_v4 }
  0x31   :  { %279 = vmatpush.bf16.msra.mxu0 %v1391_v39 }
  0x32   :  { %346 = vmatpush.bf16.msra.mxu1 %v1383_v40 }
  0x33   :  { %432 = vmatpush.bf16.msra.mxu2 %v1399_v43  ;;  %524 = vmatpush.bf16.msra.mxu3 %v1408_v5 }
  0x34   :  { %280 = vmatmul.bf16.vlgmr.msra.gmra.mxu0 %v205_v46 }
  0x35   :  { %1162 = vmatmul.msk.bf16.vlgmr.msra.gmra.mxu1 %vm1722_vm5, %v1161_v47 }
  0x36   :  { %1202 = vmatmul.msk.bf16.vlgmr.msra.gmra.mxu2 %vm1727_vm6, %v1201_v49 }
  0x37   :  { %525 = vmatpush.bf16.msra.mxu3 %v1407_v6 }
  0x44   :  { %285 = vmatmul.bf16.gmra.mxu0 %v206_v61 }
  0x45   :  { %1166 = vmatmul.msk.bf16.gmra.mxu1 %vm1750_vm9, %v1165_v62 }
  0x46   :  { %1206 = vmatmul.msk.bf16.gmra.mxu2 %vm1755_vm10, %v1205_v0 }
  0xb1   :  { %v281_v7 = vpop.f32.mrf.mxu0 }
  0xb2   :  { %v348_v8 = vpop.f32.mrf.mxu1 }
  0xb3   :  { %v349_v12 = vadd.f32 %v348_v8, %v281_v7 }
  0xb9   :  { %v434_v9 = vpop.f32.mrf.mxu2  ;;  %v283_v10 = vpop.f32.mrf.mxu0 }
  0xba   :  { %v350_v11 = vpop.f32.mrf.mxu1  ;;  %v444_v13 = vadd.f32 %v434_v9, %v349_v12  ;;  %v1438_v12 = vld [vmem:[#allocation7 + $0xb8] sm:$0xff] }
  0xbb   :  { %v351_v14 = vadd.f32 %v350_v11, %v283_v10  ;;  %v1430_v11 = vld [vmem:[#allocation7 + $0x78] sm:$0xff]  ;;  %875 = vmatpush.bf16.msrb.mxu2 %v1438_v12 }
  0xbc   :  { %v448_v20 = vmax.f32 %v444_v13, 0.0  ;;  %722 = vmatpush.bf16.msrb.mxu0 %v1430_v11  ;;  %v1422_v13 = vld [vmem:[#allocation7 + $0x38] sm:$0xff] }
  0xbd   :  { %789 = vmatpush.bf16.msrb.mxu1 %v1422_v13 }
  0xc1   :  { %v436_v15 = vpop.f32.mrf.mxu2  ;;  %v286_v18 = vpop.f32.mrf.mxu0 }
  0xc2   :  { %v445_v17 = vadd.f32 %v436_v15, %v351_v14  ;;  %v353_v19 = vpop.f32.mrf.mxu1  ;;  %v1429_v14 = vld [vmem:[#allocation7 + $0x70] sm:$0xff] }
  0xc3   :  { %v354_v28 = vadd.f32 %v353_v19, %v286_v18  ;;  %723 = vmatpush.bf16.msrb.mxu0 %v1429_v14  ;;  %v1437_v15 = vld [vmem:[#allocation7 + $0xb0] sm:$0xff]  ;;  %v1428_v18 = vld [vmem:[#allocation7 + $0x68] sm:$0xff] }
  0xc4   :  { %v449_v25 = vmax.f32 %v445_v17, 0.0  ;;  %v1421_v17 = vld [vmem:[#allocation7 + $0x30] sm:$0xff]  ;;  %876 = vmatpush.bf16.msrb.mxu2 %v1437_v15  ;;  %v1436_v19 = vld [vmem:[#allocation7 + $0xa8] sm:$0xff] }
  0xc5   :  { %790 = vmatpush.bf16.msrb.mxu1 %v1421_v17 }
  0xc6   :  { %v452_v26 = vpack.c.bf16 %v449_v25, %v448_v20  ;;  %v1420_v20 = vld [vmem:[#allocation7 + $0x28] sm:$0xff]  ;;  %v1427_v25 = vld [vmem:[#allocation7 + $0x60] sm:$0xff] }
  0xc7   :  { %724 = vmatpush.bf16.msrb.mxu0 %v1428_v18 }
  0xc8   :  { %526 = vmatmul.bf16.vlgmr.msra.gmra.mxu3 %v452_v26  ;;  %877 = vmatpush.bf16.msrb.mxu2 %v1436_v19  ;;  %v1435_v26 = vld [vmem:[#allocation7 + $0xa0] sm:$0xff] }
  0xc9   :  { %v439_v27 = vpop.f32.mrf.mxu2  ;;  %v288_v29 = vpop.f32.mrf.mxu0  ;;  %791 = vmatpush.bf16.msrb.mxu1 %v1420_v20 }
  0xca   :  { %v355_v30 = vpop.f32.mrf.mxu1  ;;  %v446_v31 = vadd.f32 %v439_v27, %v354_v28  ;;  %v1419_v27 = vld [vmem:[#allocation7 + $0x20] sm:$0xff]  ;;  %v1426_v28 = vld [vmem:[#allocation7 + $0x58] sm:$0xff] }
  0xcb   :  { %v356_v32 = vadd.f32 %v355_v30, %v288_v29  ;;  %725 = vmatpush.bf16.msrb.mxu0 %v1427_v25  ;;  %v1434_v29 = vld [vmem:[#allocation7 + $0x98] sm:$0xff] }
  0xcc   :  { %v450_v35 = vmax.f32 %v446_v31, 0.0  ;;  %878 = vmatpush.bf16.msrb.mxu2 %v1435_v26  ;;  %v1418_v30 = vld [vmem:[#allocation7 + $0x18] sm:$0xff]  ;;  %v1425_v31 = vld [vmem:[#allocation7 + $0x50] sm:$0xff] }
  0xcd   :  { %792 = vmatpush.bf16.msrb.mxu1 %v1419_v27 }
  0xcf   :  { %726 = vmatpush.bf16.msrb.mxu0 %v1426_v28 }
  0xd0   :  { %879 = vmatpush.bf16.msrb.mxu2 %v1434_v29 }
  0xd1   :  { %v441_v33 = vpop.f32.mrf.mxu2  ;;  %793 = vmatpush.bf16.msrb.mxu1 %v1418_v30 }
  0xd2   :  { %v447_v34 = vadd.f32 %v441_v33, %v356_v32  ;;  %v1433_v32 = vld [vmem:[#allocation7 + $0x90] sm:$0xff] }
  0xd3   :  { %727 = vmatpush.bf16.msrb.mxu0 %v1425_v31  ;;  %v1417_v33 = vld [vmem:[#allocation7 + $0x10] sm:$0xff] }
  0xd4   :  { %v451_v36 = vmax.f32 %v447_v34, 0.0  ;;  %880 = vmatpush.bf16.msrb.mxu2 %v1433_v32 }
  0xd5   :  { %794 = vmatpush.bf16.msrb.mxu1 %v1417_v33 }
  0xd6   :  { %v453_v37 = vpack.c.bf16 %v451_v36, %v450_v35  ;;  %v1424_v35 = vld [vmem:[#allocation7 + $0x48] sm:$0xff] }
  0xd7   :  { %728 = vmatpush.bf16.msrb.mxu0 %v1424_v35 }
  0xd8   :  { %531 = vmatmul.bf16.gmra.mxu3 %v453_v37 }
 0x14b   :  { %v1778_v38 = vpop.f32.mrf.mxu3 }
 0x14c   :  { %v539_v42 = vmul.f32 %v1778_v38, %v1778_v38 }
 0x153   :  { %v1780_v39 = vpop.f32.mrf.mxu3 }
 0x154   :  { %v540_v41 = vmul.f32 %v1780_v39, %v1780_v39  ;;  %v543_v43 = vadd.f32 %v1780_v39, %v1778_v38 }
 0x156   :  { %v552_v45 = vadd.f32 %v540_v41, %v539_v42  ;;  %v1432_v41 = vld [vmem:[#allocation7 + $0x88] sm:$0xff] }
 0x157   :  { %v1416_v42 = vld [vmem:[#allocation7 + $0x8] sm:$0xff]  ;;  %881 = vmatpush.bf16.msrb.mxu2 %v1432_v41 }
 0x158   :  { %795 = vmatpush.bf16.msrb.mxu1 %v1416_v42  ;;  %v1443_v42 = vld [vmem:[#allocation8 + $0x20] sm:$0xff] }
 0x15b   :  { %v1782_v40 = vpop.f32.mrf.mxu3 }
 0x15c   :  { %v541_v44 = vmul.f32 %v1782_v40, %v1782_v40  ;;  %v544_v46 = vadd.f32 %v543_v43, %v1782_v40  ;;  %v1423_v43 = vld [vmem:[#allocation7 + $0x40] sm:$0xff] }
 0x15d   :  { %729 = vmatpush.bf16.msrb.mxu0 %v1423_v43  ;;  %v1442_v43 = vld [vmem:[#allocation8 + $0x18] sm:$0xff] }
 0x15e   :  { %v553_v49 = vadd.f32 %v552_v45, %v541_v44  ;;  %v1431_v45 = vld [vmem:[#allocation7 + $0x80] sm:$0xff] }
 0x15f   :  { %882 = vmatpush.bf16.msrb.mxu2 %v1431_v45  ;;  %v1440_v45 = vld [vmem:[#allocation8 + $0x8] sm:$0xff] }
 0x163   :  { %v1793_v47 = vpop.f32.mrf.mxu3 }
 0x164   :  { %v542_v51 = vmul.f32 %v1793_v47, %v1793_v47  ;;  %v545_v52 = vadd.f32 %v544_v46, %v1793_v47 }
 0x166   :  { %v546_v53 = vrot.slane %v545_v52, 4  ;;  %v554_v54 = vadd.f32 %v553_v49, %v542_v51  ;;  %v1415_v49 = vld [vmem:[#allocation7] sm:$0xff] }
 0x167   :  { %796 = vmatpush.bf16.msrb.mxu1 %v1415_v49 }
 0x168   :  { %v547_v55 = vadd.f32 %v546_v53, %v545_v52  ;;  %v555_v56 = vrot.slane %v554_v54, 4 }
 0x16a   :  { %v548_v57 = vrot.slane %v547_v55, 2  ;;  %v556_v58 = vadd.f32 %v555_v56, %v554_v54 }
 0x16c   :  { %v549_v59 = vadd.f32 %v548_v57, %v547_v55  ;;  %v557_v60 = vrot.slane %v556_v58, 2 }
 0x16e   :  { %v550_v61 = vrot.slane %v549_v59, 1  ;;  %v558_v62 = vadd.f32 %v557_v60, %v556_v58  ;;  %v1463_v58 = vld [vmem:[%s1879_s3] ss:$0 sm:$0xff] }
 0x170   :  { %v559_v0 = vrot.slane %v558_v62, 1  ;;  %v551_v2 = vadd.f32 %v550_v61, %v549_v59  ;;  %v1446_v61 = vld [vmem:[#allocation8 + $0x38] sm:$0xff] }
 0x171   :  { %968 = vmatpush.bf16.msrb.mxu3 %v1446_v61 }
 0x172   :  { %v560_v3 = vadd.f32 %v559_v0, %v558_v62 }
 0x174   :  { %v562_v4 = vsel %vm561_vm11, %v551_v2, %v560_v3  ;;  %v1445_v2 = vld [vmem:[#allocation8 + $0x30] sm:$0xff] }
 0x175   :  { %563 = vrot.lane.b32.xlu0 %v562_v4, %s1604_s1  ;;  %969 = vmatpush.bf16.msrb.mxu3 %v1445_v2 }
 0x179   :  { %970 = vmatpush.bf16.msrb.mxu3 %v1444_v50 }
 0x17d   :  { %971 = vmatpush.bf16.msrb.mxu3 %v1443_v42 }
 0x181   :  { %972 = vmatpush.bf16.msrb.mxu3 %v1442_v43 }
 0x1e7   :  { %v564_v5 = vpop.permute.xlu0 %563 }
 0x1e8   :  { %v565_v6 = vadd.f32 %v564_v5, %v562_v4 }
 0x1ea   :  { %566 = vrot.lane.b32.xlu0 %v565_v6, %s1608_s2 }
 0x25c   :  { %v567_v7 = vpop.permute.xlu0 %566 }
 0x25d   :  { %v568_v8 = vadd.f32 %v567_v7, %v565_v6 }
 0x25f   :  { %569 = vrot.lane.b32.xlu1 %v568_v8, %s1609_s25 }
 0x2d1   :  { %v570_v9 = vpop.permute.xlu1 %569 }
 0x2d2   :  { %v571_v10 = vadd.f32 %v570_v9, %v568_v8  ;;  %v1464_v8 = vld [vmem:[%s1880_s4] ss:$0 sm:$0xff] }
 0x2d4   :  { %572 = vrot.lane.b32.xlu1 %v571_v10, %s1600_s17 }
 0x346   :  { %v573_v34 = vpop.permute.xlu1 %572 }
 0x347   :  { %v574_v36 = vadd.f32 %v573_v34, %v571_v10 }
 0x349   :  { %v575_v37 = vmul.f32 0.001953125, %v574_v36 }
 0x34b   :  { %v576_v44 = vmul.f32 %v575_v37, %v575_v37  ;;  %v581_v59 = vperm.slane %v575_v37, 0 }
 0x34d   :  { %v578_v46 = vrot.slane %v576_v44, 7  ;;  %v584_v3 = vsub.f32 %v1782_v40, %v581_v59  ;;  %v585_v4 = vsub.f32 %v1793_v47, %v581_v59  ;;  %v582_v6 = vsub.f32 %v1778_v38, %v581_v59  ;;  %v1441_v44 = vld [vmem:[#allocation8 + $0x10] sm:$0xff] }
 0x34e   :  { %v583_v7 = vsub.f32 %v1780_v39, %v581_v59  ;;  %973 = vmatpush.bf16.msrb.mxu3 %v1441_v44 }
 0x34f   :  { %v580_v51 = vsub.f32 %v575_v37, %v578_v46 }
 0x351   :  { %v586_v52 = vadd.f32 1e-05, %v580_v51 }
 0x352   :  { %974 = vmatpush.bf16.msrb.mxu3 %v1440_v45 }
 0x353   :  { %1467 = vrsqrt.f32 %v586_v52  ;;  %vm593_vm13 = vweird.f32 %v586_v52 }
 0x356   :  { %975 = vmatpush.bf16.msrb.mxu3 %v1439_v16 }
 0x359   :  { %v1468_v53 = vpop.eup %1467 }
 0x35a   :  { %v588_v54 = vmul.f32 %v1468_v53, %v586_v52  ;;  %vm594_vm12 = vweird.f32 %v1468_v53 }
 0x35b   :  { %vm595_vm14 = vmor %vm593_vm13, %vm594_vm12 }
 0x35c   :  { %v589_v55 = vmul.f32 %v1468_v53, %v588_v54 }
 0x35e   :  { %v590_v56 = vmul.f32 0.5, %v589_v55 }
 0x360   :  { %v591_v57 = vsub.f32 1.5, %v590_v56 }
 0x362   :  { %v592_v60 = vmul.f32 %v1468_v53, %v591_v57 }
 0x364   :  { %v596_v62 = vsel %vm595_vm14, %v1468_v53, %v592_v60 }
 0x365   :  { %v600_v0 = vmul.f32 %v1463_v58, %v596_v62 }
 0x367   :  { %v601_v5 = vperm.slane %v600_v0, 1 }
 0x369   :  { %v604_v9 = vmul.f32 %v601_v5, %v584_v3  ;;  %v605_v10 = vmul.f32 %v601_v5, %v585_v4  ;;  %v602_v11 = vmul.f32 %v601_v5, %v582_v6  ;;  %v603_v12 = vmul.f32 %v601_v5, %v583_v7 }
 0x36b   :  { %v609_v13 = vadd.f32 %v1464_v8, %v602_v11  ;;  %v610_v14 = vadd.f32 %v1464_v8, %v603_v12  ;;  %v612_v15 = vadd.f32 %v1464_v8, %v605_v10  ;;  %v611_v40 = vadd.f32 %v1464_v8, %v604_v9 }
 0x36d   :  { %v655_v17 = vpack.c.bf16 %v610_v14, %v609_v13  ;;  %v613_v47 = vrot.slane %v609_v13, 7  ;;  %v614_v18 = vrot.slane %v610_v14, 7  ;;  %v616_v19 = vrot.slane %v612_v15, 7 }
 0x36e   :  { %v625_v38 = vrot.slane %v609_v13, 1  ;;  %v626_v20 = vrot.slane %v610_v14, 1  ;;  %v627_v39 = vrot.slane %v611_v40, 1  ;;  %v615_v31 = vrot.slane %v611_v40, 7 }
 0x36f   :  { %730 = vmatmul.bf16.vlgmr.msrb.gmra.mxu0 %v655_v17  ;;  %v619_v25 = vsel %vm165_vm0, %v613_v47, %v614_v18  ;;  %v620_v26 = vsel %vm165_vm0, %v616_v19, %v613_v47  ;;  %v628_v32 = vrot.slane %v612_v15, 1  ;;  %v656_v33 = vpack.c.bf16 %v612_v15, %v611_v40 }
 0x370   :  { %v1305_v27 = vpack.c.bf16 %v619_v25, %v620_v26  ;;  %v630_v28 = vsel %vm178_vm1, %v626_v20, %v627_v39  ;;  %v631_v29 = vsel %vm178_vm1, %v625_v38, %v626_v20  ;;  %v617_v34 = vsel %vm165_vm0, %v615_v31, %v616_v19 }
 0x371   :  { %v1345_v30 = vpack.c.bf16 %v630_v28, %v631_v29  ;;  %v618_v35 = vsel %vm165_vm0, %v614_v18, %v615_v31  ;;  %v629_v36 = vsel %vm178_vm1, %v627_v39, %v628_v32  ;;  %v632_v37 = vsel %vm178_vm1, %v628_v32, %v625_v38 }
 0x372   :  { %1306 = vmatmul.msk.bf16.vlgmr.msrb.gmra.mxu1 %vm1722_vm5, %v1305_v27  ;;  %v1309_v48 = vpack.c.bf16 %v617_v34, %v618_v35  ;;  %v1349_v41 = vpack.c.bf16 %v632_v37, %v629_v36 }
 0x373   :  { %1346 = vmatmul.msk.bf16.vlgmr.msrb.gmra.mxu2 %vm1727_vm6, %v1345_v30 }
 0x37f   :  { %735 = vmatmul.bf16.gmra.mxu0 %v656_v33 }
 0x382   :  { %1310 = vmatmul.msk.bf16.gmra.mxu1 %vm1750_vm9, %v1309_v48 }
 0x383   :  { %1350 = vmatmul.msk.bf16.gmra.mxu2 %vm1755_vm10, %v1349_v41 }
 0x3ec   :  { %v731_v46 = vpop.f32.mrf.mxu0 }
 0x3ef   :  { %v798_v49 = vpop.f32.mrf.mxu1 }
 0x3f0   :  { %v799_v53 = vadd.f32 %v798_v49, %v731_v46 }
 0x3f4   :  { %v733_v52 = vpop.f32.mrf.mxu0 }
 0x3f6   :  { %v884_v51 = vpop.f32.mrf.mxu2 }
 0x3f7   :  { %v800_v63 = vpop.f32.mrf.mxu1  ;;  %v894_v1 = vadd.f32 %v884_v51, %v799_v53 }
 0x3f8   :  { %v801_v54 = vadd.f32 %v800_v63, %v733_v52 }
 0x3f9   :  { %v898_v58 = vmax.f32 %v894_v1, 0.0 }
 0x3fc   :  { %v736_v60 = vpop.f32.mrf.mxu0 }
 0x3fe   :  { %v886_v55 = vpop.f32.mrf.mxu2 }
 0x3ff   :  { %v895_v56 = vadd.f32 %v886_v55, %v801_v54  ;;  %v803_v57 = vpop.f32.mrf.mxu1 }
 0x400   :  { %v804_v2 = vadd.f32 %v803_v57, %v736_v60 }
 0x401   :  { %v899_v59 = vmax.f32 %v895_v56, 0.0 }
 0x403   :  { %v902_v61 = vpack.c.bf16 %v899_v59, %v898_v58  ;;  %v1465_v58 = vld [vmem:[%s1883_s7] ss:$0 sm:$0xff]  ;;  %s1610_s7 = smov [#allocation10]  }
 0x404   :  { %v738_v3 = vpop.f32.mrf.mxu0 }
 0x405   :  { %976 = vmatmul.bf16.vlgmr.msrb.gmra.mxu3 %v902_v61 }
 0x406   :  { %v889_v62 = vpop.f32.mrf.mxu2 }
 0x407   :  { %v805_v0 = vpop.f32.mrf.mxu1  ;;  %v896_v4 = vadd.f32 %v889_v62, %v804_v2 }
 0x408   :  { %v806_v5 = vadd.f32 %v805_v0, %v738_v3 }
 0x409   :  { %v900_v8 = vmax.f32 %v896_v4, 0.0 }
 0x40e   :  { %v891_v6 = vpop.f32.mrf.mxu2 }
 0x40f   :  { %v897_v7 = vadd.f32 %v891_v6, %v806_v5  ;;  %v1466_v6 = vld [vmem:[%s1884_s8] ss:$0 sm:$0xff]  ;;  %s1078_s8 = sshll.u32 %s1610_s7, 4  ;;  %s1079_s8 = int_to_ptr.vmem [resolvable:$true] %s1078_s8 }
 0x411   :  { %v901_v9 = vmax.f32 %v897_v7, 0.0 }
 0x413   :  { %v903_v10 = vpack.c.bf16 %v901_v9, %v900_v8 }
 0x415   :  { %981 = vmatmul.bf16.gmra.mxu3 %v903_v10 }
 0x488   :  { %v1837_v11 = vpop.f32.mrf.mxu3 }
 0x489   :  { %v989_v15 = vmul.f32 %v1837_v11, %v1837_v11 }
 0x490   :  { %v1839_v12 = vpop.f32.mrf.mxu3 }
 0x491   :  { %v990_v14 = vmul.f32 %v1839_v12, %v1839_v12  ;;  %v993_v40 = vadd.f32 %v1839_v12, %v1837_v11 }
 0x493   :  { %v1002_v47 = vadd.f32 %v990_v14, %v989_v15 }
 0x498   :  { %v1841_v13 = vpop.f32.mrf.mxu3 }
 0x499   :  { %v991_v17 = vmul.f32 %v1841_v13, %v1841_v13  ;;  %v994_v18 = vadd.f32 %v993_v40, %v1841_v13 }
 0x49b   :  { %v1003_v38 = vadd.f32 %v1002_v47, %v991_v17 }
 0x4a0   :  { %v984_v19 = vpop.f32.mrf.mxu3 }
 0x4a1   :  { %v992_v20 = vmul.f32 %v984_v19, %v984_v19  ;;  %v995_v39 = vadd.f32 %v994_v18, %v984_v19 }
 0x4a3   :  { %v996_v25 = vrot.slane %v995_v39, 4  ;;  %v1004_v26 = vadd.f32 %v1003_v38, %v992_v20 }
 0x4a5   :  { %v997_v27 = vadd.f32 %v996_v25, %v995_v39  ;;  %v1005_v28 = vrot.slane %v1004_v26, 4 }
 0x4a7   :  { %v998_v29 = vrot.slane %v997_v27, 2  ;;  %v1006_v30 = vadd.f32 %v1005_v28, %v1004_v26 }
 0x4a9   :  { %v999_v31 = vadd.f32 %v998_v29, %v997_v27  ;;  %v1007_v32 = vrot.slane %v1006_v30, 2 }
 0x4ab   :  { %v1000_v33 = vrot.slane %v999_v31, 1  ;;  %v1008_v34 = vadd.f32 %v1007_v32, %v1006_v30 }
 0x4ad   :  { %v1009_v35 = vrot.slane %v1008_v34, 1  ;;  %v1001_v36 = vadd.f32 %v1000_v33, %v999_v31 }
 0x4af   :  { %v1010_v37 = vadd.f32 %v1009_v35, %v1008_v34 }
 0x4b1   :  { %v1011_v48 = vsel %vm561_vm11, %v1001_v36, %v1010_v37 }
 0x4b2   :  { %1012 = vrot.lane.b32.xlu2 %v1011_v48, %s1604_s1 }
 0x50c   :  { %v1013_v41 = vpop.permute.xlu2 %1012 }
 0x50d   :  { %v1014_v50 = vadd.f32 %v1013_v41, %v1011_v48 }
 0x50f   :  { %1015 = vrot.lane.b32.xlu2 %v1014_v50, %s1608_s2 }
 0x569   :  { %v1016_v42 = vpop.permute.xlu2 %1015 }
 0x56a   :  { %v1017_v43 = vadd.f32 %v1016_v42, %v1014_v50 }
 0x56c   :  { %1018 = vrot.lane.b32.xlu0 %v1017_v43, %s1609_s25 }
 0x5de   :  { %v1019_v44 = vpop.permute.xlu0 %1018 }
 0x5df   :  { %v1020_v45 = vadd.f32 %v1019_v44, %v1017_v43 }
 0x5e1   :  { %1021 = vrot.lane.b32.xlu1 %v1020_v45, %s1600_s17 }
 0x653   :  { %v1022_v16 = vpop.permute.xlu1 %1021 }
 0x654   :  { %v1023_v46 = vadd.f32 %v1022_v16, %v1020_v45 }
 0x656   :  { %v1024_v49 = vmul.f32 0.001953125, %v1023_v46 }
 0x658   :  { %v1025_v51 = vmul.f32 %v1024_v49, %v1024_v49  ;;  %v1030_v59 = vperm.slane %v1024_v49, 0 }
 0x65a   :  { %v1027_v63 = vrot.slane %v1025_v51, 7  ;;  %v1031_v0 = vsub.f32 %v1837_v11, %v1030_v59  ;;  %v1032_v2 = vsub.f32 %v1839_v12, %v1030_v59  ;;  %v1033_v3 = vsub.f32 %v1841_v13, %v1030_v59 }
 0x65b   :  { %v1034_v4 = vsub.f32 %v984_v19, %v1030_v59 }
 0x65c   :  { %v1029_v52 = vsub.f32 %v1024_v49, %v1027_v63 }
 0x65e   :  { %v1035_v53 = vadd.f32 1e-05, %v1029_v52 }
 0x660   :  { %1469 = vrsqrt.f32 %v1035_v53  ;;  %vm1042_vm0 = vweird.f32 %v1035_v53 }
 0x666   :  { %v1470_v1 = vpop.eup %1469 }
 0x667   :  { %v1037_v54 = vmul.f32 %v1470_v1, %v1035_v53  ;;  %vm1043_vm15 = vweird.f32 %v1470_v1 }
 0x668   :  { %vm1044_vm1 = vmor %vm1042_vm0, %vm1043_vm15 }
 0x669   :  { %v1038_v55 = vmul.f32 %v1470_v1, %v1037_v54 }
 0x66b   :  { %v1039_v56 = vmul.f32 0.5, %v1038_v55 }
 0x66d   :  { %v1040_v57 = vsub.f32 1.5, %v1039_v56 }
 0x66f   :  { %v1041_v60 = vmul.f32 %v1470_v1, %v1040_v57 }
 0x671   :  { %v1045_v61 = vsel %vm1044_vm1, %v1470_v1, %v1041_v60 }
 0x672   :  { %v1049_v62 = vmul.f32 %v1465_v58, %v1045_v61 }
 0x674   :  { %v1050_v5 = vperm.slane %v1049_v62, 1 }
 0x676   :  { %v1051_v7 = vmul.f32 %v1050_v5, %v1031_v0  ;;  %v1052_v8 = vmul.f32 %v1050_v5, %v1032_v2  ;;  %v1053_v9 = vmul.f32 %v1050_v5, %v1033_v3  ;;  %v1054_v10 = vmul.f32 %v1050_v5, %v1034_v4 }
 0x678   :  { %v1058_v14 = vadd.f32 %v1466_v6, %v1051_v7  ;;  %v1059_v15 = vadd.f32 %v1466_v6, %v1052_v8  ;;  %v1060_v40 = vadd.f32 %v1466_v6, %v1053_v9  ;;  %v1061_v17 = vadd.f32 %v1466_v6, %v1054_v10 }
 0x67a   :  { %v1062_v11 = vadd.f32 %v1058_v14, %v1687_v21  ;;  %v1063_v12 = vadd.f32 %v1059_v15, %v1689_v22  ;;  %v1064_v13 = vadd.f32 %v1060_v40, %v1693_v24  ;;  %v1065_v47 = vadd.f32 %v1061_v17, %v1691_v23 }
 0x67c   :  { %v1066_v18 = vmax.f32 %v1062_v11, 0.0  ;;  %v1067_v19 = vmax.f32 %v1063_v12, 0.0  ;;  %v1068_v38 = vmax.f32 %v1064_v13, 0.0  ;;  %v1069_v20 = vmax.f32 %v1065_v47, 0.0 }
 0x67e   :  { %1070 = vst [vmem:[#allocation10] sm:$0xff] %v1066_v18 }
 0x67f   :  { %1071 = vst [vmem:[#allocation10 + $0x8] sm:$0xff] %v1067_v19 }
 0x680   :  { %1072 = vst [vmem:[#allocation10 + $0x10] sm:$0xff] %v1068_v38 }
 0x681   :  { %1073 = vst [vmem:[#allocation10 + $0x18] sm:$0xff] %v1069_v20 }
 0x682   :  { %1086 = dma.vmem_to_hbm [thread:$0]  %s1079_s8, 512, %s1081_s10, [#allocation4], %s1603_s21, %s1603_s21, %s1604_s1  }
 0x683   :  { %1597 = dma.done.wait [#allocation4], 512  }
 0x684   :  { %1598 = vsyncadd [#allocation4], 4294966784 }
 0x685   :  { %1091 = vsyncpa [#allocation3], 1 }
 0x686   :  { %1092 = vsyncpa [#allocation6], 1 }
 0x687   :  { %1093 = vsyncpa [#allocation9], 1 }
 0x688   :  { %1094 = vsyncpa [#allocation4], 1 }

</bundles_post_ra>
